<compile_context>
chip_gen: v5e
topology: v5e:2x2
jax: 0.10.0
libtpu: 0.0.40
codegen_flags: <defaults>
</compile_context>

<pallas_src>
import numpy as np
import jax
import jax.numpy as jnp
from jax.experimental import pallas as pl
from jax.experimental.pallas import tpu as pltpu

NUM_TYPES = 3            # len(allowable_features['node_type'])
EMB_DIM = 3              # NodeEncoder default emb_dim
OUT_DIM = EMB_DIM + 1    # embedding dims + x[:, 1]
LANE = 128               # TPU lane width
MAX_BLOCK_N = 16384      # nodes per grid step (lane axis, multiple of 128)


# -----------------------------------------------------------------------------
# Pallas kernel: lane-dense embedding lookup (select chain) + feature concat.
# -----------------------------------------------------------------------------
def _node_encoder_kernel(x_ref, emb_ref, out_ref):
    # x_ref  : (2, BN) int32  VMEM   row 0 = node type, row 1 = num_inv_preds
    # emb_ref: (NUM_TYPES*EMB_DIM,) f32 SMEM (flattened 3x3 table)
    # out_ref: (OUT_DIM, BN) f32 VMEM
    idx = x_ref[0:1, :]                          # (1, BN) int32, lane-dense
    feat = x_ref[1:2, :].astype(jnp.float32)     # (1, BN) f32

    is0 = idx == 0
    is1 = idx == 1

    rows = []
    for d in range(EMB_DIM):                     # static unroll: 3 output dims
        t0 = emb_ref[0 * EMB_DIM + d]            # scalar loads from SMEM ride
        t1 = emb_ref[1 * EMB_DIM + d]            # the free scalar slot
        t2 = emb_ref[2 * EMB_DIM + d]
        # select chain (no mask->float, no mul/add): 2 selects per output dim
        rows.append(jnp.where(is0, t0, jnp.where(is1, t1, t2)))
    rows.append(feat)

    # One dense, lane-wide store of the whole (OUT_DIM, BN) tile.
    out_ref[...] = jnp.concatenate(rows, axis=0)


# -----------------------------------------------------------------------------
# Wrapper: transpose to lane-dense layout, 1-D "parallel" grid over node blocks.
# -----------------------------------------------------------------------------
@jax.jit
def node_encoder(x, emb_table):
    """x: (N, 2) integer features, emb_table: (NUM_TYPES, EMB_DIM) float32.

    Returns (N, OUT_DIM) float32, matching the PyTorch module's output layout.
    """
    n = x.shape[0]
    block_n = min(MAX_BLOCK_N, pl.cdiv(n, LANE) * LANE)   # lane-axis block
    grid = (pl.cdiv(n, block_n),)

    x_t = x.astype(jnp.int32).T                        # (2, N): N on the lane axis
    emb_flat = emb_table.astype(jnp.float32).reshape(-1)   # (9,) -> SMEM

    out_t = pl.pallas_call(
        _node_encoder_kernel,
        out_shape=jax.ShapeDtypeStruct((OUT_DIM, n), jnp.float32),
        grid=grid,
        in_specs=[
            pl.BlockSpec((2, block_n), lambda i: (0, i)),
            pl.BlockSpec(memory_space=pltpu.MemorySpace.SMEM),
        ],
        out_specs=pl.BlockSpec((OUT_DIM, block_n), lambda i: (0, i)),
        compiler_params=pltpu.CompilerParams(
            dimension_semantics=("parallel",)),
        cost_estimate=pl.CostEstimate(
            flops=6 * n,                 # compares + selects
            transcendentals=0,
            bytes_accessed=8 * n + 16 * n),   # (2 int32 in + 4 f32 out) per node
    )(x_t, emb_flat)

    return out_t.T                                    # (N, OUT_DIM)


# -----------------------------------------------------------------------------
# Deterministic parameter init (mirrors torch.nn.init.xavier_uniform_).
# -----------------------------------------------------------------------------
def init_params(key):
    xavier = jax.nn.initializers.glorot_uniform()
    emb_table = xavier(key, (NUM_TYPES, EMB_DIM), jnp.float32)
    return {"emb_table": emb_table}


# -----------------------------------------------------------------------------
# Pure-JAX reference (same math as the PyTorch forward).
# -----------------------------------------------------------------------------
def reference(x, emb_table):
    emb = emb_table[x[:, 0]]                                   # (N, EMB_DIM)
    feat = x[:, 1:2].astype(jnp.float32)                       # (N, 1)
    return jnp.concatenate([emb, feat], axis=1)                # (N, OUT_DIM)


if __name__ == "__main__":
    key = jax.random.PRNGKey(0)
    wkey, tkey, fkey = jax.random.split(key, 3)

    N = 16
    node_type = jax.random.randint(tkey, (N, 1), 0, NUM_TYPES, dtype=jnp.int32)
    num_inv_pred = jax.random.randint(fkey, (N, 1), 0, 3, dtype=jnp.int32)
    x = jnp.concatenate([node_type, num_inv_pred], axis=1)     # (N, 2) int32

    params = init_params(wkey)

    out = jax.block_until_ready(node_encoder(x, params["emb_table"]))

    ref = reference(x, params["emb_table"])
    np.testing.assert_allclose(np.asarray(out), np.asarray(ref),
                               rtol=1e-6, atol=1e-6)
    assert out.shape == (N, OUT_DIM)
    print("KERNEL_OK")
</pallas_src>

<mosaic_0001>
module attributes {stable_mosaic.version = 11 : i64} {
  func.func @_node_encoder_kernel(%arg0: i32, %arg1: memref<2x128xi32, #tpu.memory_space<vmem>>, %arg2: memref<9xf32, #tpu.memory_space<smem>>, %arg3: memref<4x128xf32, #tpu.memory_space<vmem>>) attributes {dimension_semantics = [#tpu.dimension_semantics<parallel>], iteration_bounds = array<i64: 1>, scalar_prefetch = 0 : i64, scratch_operands = 0 : i64, tpu.core_type = #tpu.core_type<tc>, window_params = [{transform_indices = @transform_0, window_bounds = array<i64: 2, 128>}, {transform_indices = @transform_1, window_bounds = array<i64: 9>}, {transform_indices = @transform_2, window_bounds = array<i64: 4, 128>}]} {
    %c0 = arith.constant 0 : index
    %c0_0 = arith.constant 0 : index
    %0 = vector.load %arg1[%c0, %c0_0] : memref<2x128xi32, #tpu.memory_space<vmem>>, vector<1x128xi32>
    %c1 = arith.constant 1 : index
    %c0_1 = arith.constant 0 : index
    %1 = vector.load %arg1[%c1, %c0_1] : memref<2x128xi32, #tpu.memory_space<vmem>>, vector<1x128xi32>
    %2 = arith.sitofp %1 : vector<1x128xi32> to vector<1x128xf32>
    %c0_i32 = arith.constant 0 : i32
    %3 = vector.broadcast %c0_i32 : i32 to vector<1x128xi32>
    %4 = arith.cmpi eq, %0, %3 : vector<1x128xi32>
    %c1_i32 = arith.constant 1 : i32
    %5 = vector.broadcast %c1_i32 : i32 to vector<1x128xi32>
    %6 = arith.cmpi eq, %0, %5 : vector<1x128xi32>
    %c0_2 = arith.constant 0 : index
    %7 = memref.load %arg2[%c0_2] : memref<9xf32, #tpu.memory_space<smem>>
    %c3 = arith.constant 3 : index
    %8 = memref.load %arg2[%c3] : memref<9xf32, #tpu.memory_space<smem>>
    %c6 = arith.constant 6 : index
    %9 = memref.load %arg2[%c6] : memref<9xf32, #tpu.memory_space<smem>>
    %10 = vector.broadcast %8 : f32 to vector<1x128xf32>
    %11 = vector.broadcast %9 : f32 to vector<1x128xf32>
    %12 = arith.select %6, %10, %11 : vector<1x128xi1>, vector<1x128xf32>
    %13 = vector.broadcast %7 : f32 to vector<1x128xf32>
    %14 = arith.select %4, %13, %12 : vector<1x128xi1>, vector<1x128xf32>
    %c1_3 = arith.constant 1 : index
    %15 = memref.load %arg2[%c1_3] : memref<9xf32, #tpu.memory_space<smem>>
    %c4 = arith.constant 4 : index
    %16 = memref.load %arg2[%c4] : memref<9xf32, #tpu.memory_space<smem>>
    %c7 = arith.constant 7 : index
    %17 = memref.load %arg2[%c7] : memref<9xf32, #tpu.memory_space<smem>>
    %18 = vector.broadcast %16 : f32 to vector<1x128xf32>
    %19 = vector.broadcast %17 : f32 to vector<1x128xf32>
    %20 = arith.select %6, %18, %19 : vector<1x128xi1>, vector<1x128xf32>
    %21 = vector.broadcast %15 : f32 to vector<1x128xf32>
    %22 = arith.select %4, %21, %20 : vector<1x128xi1>, vector<1x128xf32>
    %c2 = arith.constant 2 : index
    %23 = memref.load %arg2[%c2] : memref<9xf32, #tpu.memory_space<smem>>
    %c5 = arith.constant 5 : index
    %24 = memref.load %arg2[%c5] : memref<9xf32, #tpu.memory_space<smem>>
    %c8 = arith.constant 8 : index
    %25 = memref.load %arg2[%c8] : memref<9xf32, #tpu.memory_space<smem>>
    %26 = vector.broadcast %24 : f32 to vector<1x128xf32>
    %27 = vector.broadcast %25 : f32 to vector<1x128xf32>
    %28 = arith.select %6, %26, %27 : vector<1x128xi1>, vector<1x128xf32>
    %29 = vector.broadcast %23 : f32 to vector<1x128xf32>
    %30 = arith.select %4, %29, %28 : vector<1x128xi1>, vector<1x128xf32>
    %31 = tpu.concatenate %14, %22, %30, %2 in 0 : vector<1x128xf32>, vector<1x128xf32>, vector<1x128xf32>, vector<1x128xf32> -> vector<4x128xf32>
    %c0_4 = arith.constant 0 : index
    %c0_5 = arith.constant 0 : index
    %32 = vector.load %arg3[%c0_4, %c0_5] : memref<4x128xf32, #tpu.memory_space<vmem>>, vector<4x128xf32>
    tpu.vector_store %arg3[%c0_4, %c0_5], %31 {strides = array<i32>} : memref<4x128xf32, #tpu.memory_space<vmem>>, vector<4x128xf32>,
    return
  }
  func.func @transform_0(%arg0: i32) -> (i32, i32) {
    %c0_i32 = arith.constant 0 : i32
    %c0_i32_0 = arith.constant 0 : i32
    return %c0_i32, %arg0 : i32, i32
  }
  func.func @transform_1(%arg0: i32) -> i32 {
    %c0_i32 = arith.constant 0 : i32
    %c0_i32_0 = arith.constant 0 : i32
    return %c0_i32 : i32
  }
  func.func @transform_2(%arg0: i32) -> (i32, i32) {
    %c0_i32 = arith.constant 0 : i32
    %c0_i32_0 = arith.constant 0 : i32
    return %c0_i32, %arg0 : i32, i32
  }
}

</mosaic_0001>

<bundles_post_ra>
// kernel: node_encoder.1
= control target key start
LH: loop header
LB: loop body
LE: loop exit
PB: predicated region body
PF: predicated region fallthrough
CT: control target
= control target key end

     0   :  { %7 = vsyncpa [#allocation4], 0  ;;  %s169_s0 = inlined_call_operand.vmem [shape: s32[2,16], index: 0, kind: input, shape index: {}]   ;;  %s170_s1 = inlined_call_operand.vmem [shape: f32[9], index: 1, kind: input, shape index: {}]   ;;  %s171_s2 = inlined_call_operand.hbm [shape: f32[4,16], index: 2, kind: output, shape index: {}]  }
   0x1   :  { %8 = vsyncpa [#allocation3], 0  ;;  %s16_s11 = sshll.u32 %s170_s1, 4  ;;  %s137_s12 = smov [#allocation2]   ;;  %s17_s11 = int_to_ptr.vmem [resolvable:$true] %s16_s11 }
   0x2   :  { %19 = dma.vmem_to_smem %s17_s11, 16, %s137_s12, [#allocation4]  }
   0x3   :  { %133 = dma.done.wait [#allocation4], 16  }
   0x4   :  { %134 = vsyncadd [#allocation4], 4294967280 }
   0x5   :  { %24 = sfence }
   0x6   :  { %s30_s13 = sld [smem:[#allocation2]]  ;;  %v25_v0 = vld [vmem:[%s169_s0] sm:$0x1]  ;;  %v26_v3 = vld [vmem:[%s169_s0 + $0x1] sm:$0x1]  ;;  %vm63_vm2 = vcmask 1040384  }
   0x7   :  { %s87_s14 = sld [smem:[#allocation2 + $0x3]]  ;;  %vm28_vm0 = vcmp.eq.s32.totalorder %v25_v0, 0  ;;  %vm29_vm1 = vcmp.eq.s32.totalorder %v25_v0, 1  ;;  %v27_v9 = vcvt.s32.f32 %v26_v3  ;;  %vm65_vm3 = vcmask 1041408   ;;  %s138_s0 = smov [#allocation5]  }
   0x8   :  { %s88_s15 = sld [smem:[#allocation2 + $0x6]]  ;;  %s75_s25 = sshll.u32 %s138_s0, 4  ;;  %vm67_vm4 = vcmask 1042432   ;;  %s76_s25 = int_to_ptr.vmem [resolvable:$true] %s75_s25 }
   0x9   :  { %s89_s16 = sld [smem:[#allocation2 + $0x1]]  ;;  %v61_v19 = vrot.slane %v27_v9, 5  ;;  %s77_s28 = sshll.u32 %s171_s2, 4  ;;  %s78_s28 = int_to_ptr.hbm [resolvable:$true] %s77_s28 }
   0xa   :  { %s90_s17 = sld [smem:[#allocation2 + $0x4]] }
   0xb   :  { %s91_s18 = sld [smem:[#allocation2 + $0x7]] }
   0xc   :  { %s92_s21 = sld [smem:[#allocation2 + $0x2]]  ;;  %v36_v5 = vstv %s30_s13 }
   0xd   :  { %v33_v1 = vstv %s87_s14  ;;  %s93_s22 = sld [smem:[#allocation2 + $0x5]] }
   0xe   :  { %v34_v2 = vstv %s88_s15  ;;  %s94_s1 = sld [smem:[#allocation2 + $0x8]] }
   0xf   :  { %v35_v4 = vsel %vm29_vm1, %v33_v1, %v34_v2  ;;  %v44_v7 = vstv %s89_s16 }
  0x10   :  { %v41_v6 = vstv %s90_s17  ;;  %v37_v11 = vsel %vm28_vm0, %v36_v5, %v35_v4 }
  0x11   :  { %v42_v8 = vstv %s91_s18 }
  0x12   :  { %v43_v10 = vsel %vm29_vm1, %v41_v6, %v42_v8  ;;  %v52_v14 = vstv %s92_s21 }
  0x13   :  { %v45_v12 = vsel %vm28_vm0, %v44_v7, %v43_v10  ;;  %v49_v13 = vstv %s93_s22 }
  0x14   :  { %v50_v15 = vstv %s94_s1  ;;  %v55_v16 = vrot.slane %v45_v12, 7 }
  0x15   :  { %v51_v17 = vsel %vm29_vm1, %v49_v13, %v50_v15 }
  0x16   :  { %v53_v18 = vsel %vm28_vm0, %v52_v14, %v51_v17  ;;  %v64_v20 = vsel %vm63_vm2, %v37_v11, %v55_v16 }
  0x17   :  { %v58_v21 = vrot.slane %v53_v18, 6 }
  0x19   :  { %v66_v22 = vsel %vm65_vm3, %v64_v20, %v58_v21 }
  0x1a   :  { %v68_v23 = vsel %vm67_vm4, %v66_v22, %v61_v19 }
  0x1b   :  { %69 = vst [vmem:[#allocation5] sm:$0xf] %v68_v23 }
  0x1c   :  { %80 = dma.vmem_to_hbm [thread:$0]  %s76_s25, 64, %s78_s28, [#allocation3]  }
  0x1d   :  { %135 = dma.done.wait [#allocation3], 64  }
  0x1e   :  { %136 = vsyncadd [#allocation3], 4294967232 }
  0x1f   :  { %85 = vsyncpa [#allocation3], 1 }
  0x20   :  { %86 = vsyncpa [#allocation4], 1 }

</bundles_post_ra>
